<compile_context>
chip_gen: v6e
topology: v6e:2x2x1
jax: 0.10.0
libtpu: 0.0.40
codegen_flags: <defaults>
</compile_context>

<pallas_src>
import jax
import jax.numpy as jnp
from jax.experimental import pallas as pl
from jax.experimental.pallas import tpu as pltpu


def _choose_tile_rows(n_rows: int, n_cols: int, itemsize: int,
                      target_tile_bytes: int = 6 * 1024 * 1024) -> int:
    """Batch-tile height: multiple of 8 (16 for sub-32-bit dtypes), ~6 MiB/tile."""
    row_multiple = 16 if itemsize < 4 else 8
    if n_rows <= row_multiple:
        return int(n_rows)
    rows = max(row_multiple, target_tile_bytes // (itemsize * n_cols))
    rows = (rows // row_multiple) * row_multiple
    padded_rows = pl.cdiv(n_rows, row_multiple) * row_multiple
    return int(min(rows, padded_rows))


def balanced_softmax_loss(logit, target, log_cls_num, *, tile_rows=None):
    """logit: (N, C) float (f32 or bf16); target: (N,) int class ids;
    log_cls_num: (C,) or (1, C) float.

    Returns scalar mean cross-entropy of (logit + log_cls_num) vs target.
    """
    n_rows, n_cols = logit.shape
    itemsize = jnp.dtype(logit.dtype).itemsize
    if tile_rows is None:
        tile_rows = _choose_tile_rows(n_rows, n_cols, itemsize)
    num_tiles = pl.cdiv(n_rows, tile_rows)
    ragged = (num_tiles * tile_rows) != n_rows

    target_2d = target.reshape(n_rows, 1).astype(jnp.int32)
    log_cls_num = log_cls_num.reshape(1, n_cols).astype(jnp.float32)

    # Explicit VMEM budget: 2 pipeline buffers per block + slack.
    tile_bytes = tile_rows * n_cols * itemsize
    aux_bytes = tile_rows * 4 + n_cols * 4 + 8 * 128 * 4
    vmem_limit = int(min(max(2 * (tile_bytes + aux_bytes) + (4 << 20), 32 << 20),
                         48 << 20))

    cost = pl.CostEstimate(
        flops=5 * n_rows * n_cols,
        transcendentals=n_rows * n_cols + n_rows,
        bytes_accessed=(n_rows * n_cols * itemsize + n_rows * 4 + n_cols * 4
                        + num_tiles * 8 * 128 * 4),
    )

    def kernel(logit_ref, target_ref, logc_ref, out_ref):
        x = logit_ref[...].astype(jnp.float32) + logc_ref[...]        # (TM, C) f32
        tgt = target_ref[...]                                         # (TM, 1) int32

        # numerically-stable per-row log-sum-exp
        m = jnp.max(x, axis=-1, keepdims=True)
        lse = m + jnp.log(jnp.sum(jnp.exp(x - m), axis=-1, keepdims=True))

        # target logit via lane-iota compare + masked row-sum
        col_ids = jax.lax.broadcasted_iota(jnp.int32, (tile_rows, n_cols), 1)
        tgt_logit = jnp.sum(jnp.where(col_ids == tgt, x, 0.0),
                            axis=-1, keepdims=True)

        row_loss = lse - tgt_logit                                     # (TM, 1)
        if ragged:
            # Narrow (TM, 1) select: padded-row garbage (even Inf/NaN) cannot
            # propagate through a true select, so no full-tile mask is needed.
            row_ids = (pl.program_id(0) * tile_rows
                       + jax.lax.broadcasted_iota(jnp.int32, (tile_rows, 1), 0))
            row_loss = jnp.where(row_ids < n_rows, row_loss, 0.0)

        partial = jnp.sum(row_loss)                                    # tile partial sum
        out_ref[...] = jnp.broadcast_to(partial, out_ref.shape)        # lane-dense store

    partials = pl.pallas_call(
        kernel,
        out_shape=jax.ShapeDtypeStruct((num_tiles * 8, 128), jnp.float32),
        grid=(num_tiles,),
        in_specs=[
            pl.BlockSpec((tile_rows, n_cols), lambda i: (i, 0)),
            pl.BlockSpec((tile_rows, 1), lambda i: (i, 0)),
            pl.BlockSpec((1, n_cols), lambda i: (0, 0)),
        ],
        out_specs=pl.BlockSpec((8, 128), lambda i: (i, 0)),
        compiler_params=pltpu.CompilerParams(
            dimension_semantics=("parallel",),
            vmem_limit_bytes=vmem_limit),
        cost_estimate=cost,
    )(logit, target_2d, log_cls_num)

    # Tiny final reduction over per-tile partials; divide by GLOBAL batch size.
    return jnp.sum(partials[::8, 0]) / n_rows


def _reference(logit, target, log_cls_num):
    x = logit.astype(jnp.float32) + log_cls_num.reshape(1, -1).astype(jnp.float32)
    lse = jax.scipy.special.logsumexp(x, axis=-1)
    tgt_logit = jnp.take_along_axis(x, target[:, None].astype(jnp.int32), axis=-1)[:, 0]
    return jnp.mean(lse - tgt_logit)


if __name__ == "__main__":
    key = jax.random.PRNGKey(0)

    # --- Test 1: small f32 case (N=8, C=128) -------------------------------
    N, C = 8, 128
    k_logit, k_tgt, key = jax.random.split(key, 3)
    logit = jax.random.normal(k_logit, (N, C), dtype=jnp.float32)
    target = jax.random.randint(k_tgt, (N,), 0, C, dtype=jnp.int32)

    cls_num_list = 1.0 + jnp.arange(C, dtype=jnp.float32)
    log_cls_num = jnp.log(cls_num_list / jnp.sum(cls_num_list)).reshape(1, C)

    out = jax.block_until_ready(balanced_softmax_loss(logit, target, log_cls_num))
    ref = _reference(logit, target, log_cls_num)
    assert jnp.allclose(out, ref, rtol=1e-5, atol=1e-5), (out, ref)

    # --- Test 2: bf16 ingestion + ragged tail (N=40, C=256, TM=16) ---------
    N2, C2 = 40, 256
    k_logit2, k_tgt2, key = jax.random.split(key, 3)
    logit2 = jax.random.normal(k_logit2, (N2, C2), dtype=jnp.float32).astype(jnp.bfloat16)
    target2 = jax.random.randint(k_tgt2, (N2,), 0, C2, dtype=jnp.int32)

    cls_num_list2 = 1.0 + jnp.arange(C2, dtype=jnp.float32)
    log_cls_num2 = jnp.log(cls_num_list2 / jnp.sum(cls_num_list2)).reshape(1, C2)

    out2 = jax.block_until_ready(
        balanced_softmax_loss(logit2, target2, log_cls_num2, tile_rows=16))
    ref2 = _reference(logit2, target2, log_cls_num2)
    assert jnp.allclose(out2, ref2, rtol=1e-4, atol=1e-5), (out2, ref2)

    print("KERNEL_OK")
</pallas_src>

<mosaic_0001>
module attributes {stable_mosaic.version = 11 : i64} {
  func.func @kernel(%arg0: i32, %arg1: memref<8x128xf32, #tpu.memory_space<vmem>>, %arg2: memref<8x1xi32, #tpu.memory_space<vmem>>, %arg3: memref<1x128xf32, #tpu.memory_space<vmem>>, %arg4: memref<8x128xf32, #tpu.memory_space<vmem>>) attributes {dimension_semantics = [#tpu.dimension_semantics<parallel>], iteration_bounds = array<i64: 1>, scalar_prefetch = 0 : i64, scratch_operands = 0 : i64, tpu.core_type = #tpu.core_type<tc>, window_params = [{transform_indices = @transform_0, window_bounds = array<i64: 8, 128>}, {transform_indices = @transform_1, window_bounds = array<i64: 8, 1>}, {pipeline_mode = #tpu.pipeline_mode<synchronous>, transform_indices = @transform_2, window_bounds = array<i64: 1, 128>}, {transform_indices = @transform_3, window_bounds = array<i64: 8, 128>}]} {
    %c0 = arith.constant 0 : index
    %c0_0 = arith.constant 0 : index
    %0 = vector.load %arg1[%c0, %c0_0] : memref<8x128xf32, #tpu.memory_space<vmem>>, vector<8x128xf32>
    %c0_1 = arith.constant 0 : index
    %c0_2 = arith.constant 0 : index
    %1 = vector.load %arg3[%c0_1, %c0_2] : memref<1x128xf32, #tpu.memory_space<vmem>>, vector<1x128xf32>
    %2 = vector.broadcast %1 : vector<1x128xf32> to vector<8x128xf32>
    %3 = arith.addf %0, %2 : vector<8x128xf32>
    %c0_3 = arith.constant 0 : index
    %c0_4 = arith.constant 0 : index
    %4 = vector.load %arg2[%c0_3, %c0_4] : memref<8x1xi32, #tpu.memory_space<vmem>>, vector<8x1xi32>
    %cst = arith.constant dense<0xFF800000> : vector<8xf32>
    %5 = vector.multi_reduction <maximumf>, %3, %cst [1] : vector<8x128xf32> to vector<8xf32>
    %6 = vector.shape_cast %5 : vector<8xf32> to vector<8x1xf32>
    %7 = vector.broadcast %6 : vector<8x1xf32> to vector<8x128xf32>
    %8 = arith.subf %3, %7 : vector<8x128xf32>
    %9 = math.exp %8 : vector<8x128xf32>
    %cst_5 = arith.constant dense<0.000000e+00> : vector<8xf32>
    %10 = vector.multi_reduction <add>, %9, %cst_5 [1] : vector<8x128xf32> to vector<8xf32>
    %11 = vector.shape_cast %10 : vector<8xf32> to vector<8x1xf32>
    %12 = math.log %11 : vector<8x1xf32>
    %13 = arith.addf %6, %12 : vector<8x1xf32>
    %14 = tpu.iota {dimensions = array<i32: 1>} : vector<8x128xi32>
    %15 = vector.broadcast %4 : vector<8x1xi32> to vector<8x128xi32>
    %16 = arith.cmpi eq, %14, %15 : vector<8x128xi32>
    %cst_6 = arith.constant 0.000000e+00 : f32
    %17 = vector.broadcast %cst_6 : f32 to vector<8x128xf32>
    %18 = arith.select %16, %3, %17 : vector<8x128xi1>, vector<8x128xf32>
    %cst_7 = arith.constant dense<0.000000e+00> : vector<8xf32>
    %19 = vector.multi_reduction <add>, %18, %cst_7 [1] : vector<8x128xf32> to vector<8xf32>
    %20 = vector.shape_cast %19 : vector<8xf32> to vector<8x1xf32>
    %21 = arith.subf %13, %20 : vector<8x1xf32>
    %22 = vector.shape_cast %21 : vector<8x1xf32> to vector<1x8x1xf32>
    %cst_8 = arith.constant dense<0.000000e+00> : vector<1xf32>
    %23 = vector.multi_reduction <add>, %22, %cst_8 [1, 2] : vector<1x8x1xf32> to vector<1xf32>
    %24 = vector.shape_cast %23 : vector<1xf32> to vector<1x1x1xf32>
    %25 = vector.extract %24[0, 0, 0] : f32 from vector<1x1x1xf32>
    %26 = vector.broadcast %25 : f32 to vector<8x128xf32>
    %c0_9 = arith.constant 0 : index
    %c0_10 = arith.constant 0 : index
    %27 = vector.load %arg4[%c0_9, %c0_10] : memref<8x128xf32, #tpu.memory_space<vmem>>, vector<8x128xf32>
    tpu.vector_store %arg4[%c0_9, %c0_10], %26 {strides = array<i32>} : memref<8x128xf32, #tpu.memory_space<vmem>>, vector<8x128xf32>,
    return
  }
  func.func @transform_0(%arg0: i32) -> (i32, i32) {
    %c0_i32 = arith.constant 0 : i32
    %c0_i32_0 = arith.constant 0 : i32
    return %arg0, %c0_i32 : i32, i32
  }
  func.func @transform_1(%arg0: i32) -> (i32, i32) {
    %c0_i32 = arith.constant 0 : i32
    %c0_i32_0 = arith.constant 0 : i32
    return %arg0, %c0_i32 : i32, i32
  }
  func.func @transform_2(%arg0: i32) -> (i32, i32) {
    %c0_i32 = arith.constant 0 : i32
    %c0_i32_0 = arith.constant 0 : i32
    %c0_i32_1 = arith.constant 0 : i32
    return %c0_i32, %c0_i32_0 : i32, i32
  }
  func.func @transform_3(%arg0: i32) -> (i32, i32) {
    %c0_i32 = arith.constant 0 : i32
    %c0_i32_0 = arith.constant 0 : i32
    return %arg0, %c0_i32 : i32, i32
  }
}

</mosaic_0001>

<bundles_post_ra>
// kernel: tpu_custom_call.1
= control target key start
LH: loop header
LB: loop body
LE: loop exit
PB: predicated region body
PF: predicated region fallthrough
CT: control target
= control target key end

     0   :  { %v104_v3 = vmov 0   ;;  %s138_s0 = inlined_call_operand.vmem [shape: f32[8,128], index: 0, kind: input, shape index: {}]   ;;  %s139_s1 = inlined_call_operand.vmem [shape: s32[8,1], index: 1, kind: input, shape index: {}]   ;;  %s140_s2 = inlined_call_operand.vmem [shape: f32[1,128], index: 2, kind: input, shape index: {}]   ;;  %s141_s3 = inlined_call_operand.hbm [shape: f32[8,128], index: 3, kind: output, shape index: {}]  }
   0x1   :  { %v15_v0 = vld [vmem:[%s138_s0] sm:$0xff]  ;;  %77 = vset.pattern.permute.xlu0 %v104_v3 }
   0x2   :  { %v72_v1 = vld [vmem:[%s140_s2] ss:$0 sm:$0xff] }
   0x3   :  { %v23_v2 = vadd.f32 %v72_v1, %v15_v0 }
   0x4   :  { %8 = vsyncpa [#allocation3], 0  ;;  %v24_v4 = vld [vmem:[%s139_s1] sm:$0xff]  ;;  %v35_v8 = vlaneseq  ;;  %vm45_vm1 = vcmask 7168   ;;  %s105_s0 = smov [#allocation2]  }
   0x5   :  { %25 = vmax.xlane.f32.xlu0 %v23_v2  ;;  %s64_s1 = sshll.u32 %s105_s0, 4  ;;  %s65_s1 = int_to_ptr.vmem [resolvable:$true] %s64_s1 }
   0x6   :  { %v36_v9 = vand.u32 127, %v35_v8  ;;  %s82_s18 = scalar_lea.vmem %s65_s1, 128  ;;  %p87_p1 = scmp.lt.s32.totalorder %s65_s1, %s65_s1 }
   0x7   :  { %p83_p0 = scmp.ne.s32.totalorder %s65_s1, %s82_s18  ;;  %p88_p2 = scmp.lt.s32.totalorder %s82_s18, %s82_s18 }
   0x9   :  { %p89_p3 = por %p88_p2, %p87_p1 }
   0xb   :  { %p90_p4 = pnand %p89_p3, %p83_p0 }
  0x1b   :  { %38 = vperm.xlu0 %77, %v24_v4  }
  0x8e   :  { %v26_v5 = vpop.xlane.xlu0 %25 }
  0x8f   :  { %v27_v6 = vsub.f32 %v23_v2, %v26_v5 }
  0x91   :  { %v28_v7 = vmul.f32 1.442695, %v27_v6 }
  0x93   :  { %78 = vpow2.f32 %v28_v7 }
  0x96   :  { %v39_v10 = vpop.permute.xlu0 %38 }
  0x97   :  { %vm40_vm0 = vcmp.eq.s32.totalorder %v36_v9, %v39_v10 }
  0x98   :  { %v41_v12 = vsel %vm40_vm0, %v23_v2, 0.0 }
  0xa0   :  { %v79_v11 = vpop.eup %78 }
  0xa1   :  { %30 = vadd.xlane.f32.xlu1 %v79_v11 }
  0xa5   :  { %42 = vadd.xlane.f32.xlu1 %v41_v12 }
 0x12a   :  { %v31_v13 = vpop.xlane.xlu1 %30 }
 0x12b   :  { %80 = vlog2.f32 %v31_v13 }
 0x12e   :  { %v43_v16 = vpop.xlane.xlu1 %42 }
 0x138   :  { %v81_v14 = vpop.eup %80 }
 0x139   :  { %v33_v15 = vmul.f32 0.6931472, %v81_v14 }
 0x13b   :  { %v34_v17 = vadd.f32 %v33_v15, %v26_v5 }
 0x13d   :  { %v44_v18 = vsub.f32 %v34_v17, %v43_v16 }
 0x13f   :  { %v46_v19 = vsel %vm45_vm1, %v44_v18, 0.0 }
 0x140   :  { %47 = vadd.xlane.f32.xlu1 %v46_v19 }
 0x1c9   :  { %v48_v20 = vpop.xlane.xlu1 %47 }
 0x1ca   :  { %v49_v21 = vrot.slane %v48_v20, 4 }
 0x1cc   :  { %v50_v22 = vadd.f32 %v49_v21, %v48_v20 }
 0x1ce   :  { %v51_v23 = vrot.slane %v50_v22, 2 }
 0x1d0   :  { %v52_v24 = vadd.f32 %v51_v23, %v50_v22 }
 0x1d2   :  { %v53_v25 = vrot.slane %v52_v24, 1 }
 0x1d4   :  { %v54_v26 = vadd.f32 %v53_v25, %v52_v24 }
 0x1d6   :  { %73 = vpush %v54_v26 }
 0x207   :  { %s74_s2 = spop %73 }
 0x208   :  { %v56_v27 = vstv %s74_s2 }
 0x209   :  { %57 = vst [vmem:[#allocation2] sm:$0xff] %v56_v27 }
 0x20a   :  { %93 = shalt.err (!%p90_p4)
}
 0x20b   :  { %67 = dma.vmem_to_hbm [thread:$0]  %s65_s1, 128, %s141_s3, [#allocation3]  }
 0x20c   :  { %102 = dma.done.wait [#allocation3], 128  }
 0x20d   :  { %103 = vsyncadd [#allocation3], 4294967168 }
 0x20e   :  { %71 = vsyncpa [#allocation3], 1 }

</bundles_post_ra>
